<compile_context>
chip_gen: v6e
topology: v6e:2x2x1
jax: 0.10.0
libtpu: 0.0.40
codegen_flags: <defaults>
</compile_context>

<pallas_src>
import functools

import jax
import jax.numpy as jnp
from jax.experimental import pallas as pl
from jax.experimental.pallas import tpu as pltpu

LOG_STD_MIN = -20.0
LOG_STD_MAX = 2.0


def _round_up(x, m):
    return ((x + m - 1) // m) * m


def _gaussian_policy_kernel(x_ref, w1_ref, b1_ref, w2_ref, b2_ref,
                            wh_ref, bh_ref, out_ref, *, num_actions):
    A = num_actions

    # Cast MXU operands to bf16 (native rate on v5e/v6e/v7x); accumulate in f32.
    x = x_ref[...].astype(jnp.bfloat16)                          # [TB, num_inputs]

    # linear1 + ReLU
    h1 = jnp.dot(x, w1_ref[...].astype(jnp.bfloat16),
                 preferred_element_type=jnp.float32) + b1_ref[...]
    h1 = jnp.maximum(h1, 0.0).astype(jnp.bfloat16)               # [TB, H]

    # linear2 + ReLU
    h2 = jnp.dot(h1, w2_ref[...].astype(jnp.bfloat16),
                 preferred_element_type=jnp.float32) + b2_ref[...]
    h2 = jnp.maximum(h2, 0.0).astype(jnp.bfloat16)               # [TB, H]

    # Fused head: one lane-dense matmul producing all head outputs at once.
    # Columns: [0:A)=mean, [A:2A)=log_std (raw), [2A:3A)=log_std (raw, will be
    # exp'd into std), [3A:)=zero padding up to a multiple of 128 lanes.
    head = jnp.dot(h2, wh_ref[...].astype(jnp.bfloat16),
                   preferred_element_type=jnp.float32) + bh_ref[...]

    col = jax.lax.broadcasted_iota(jnp.int32, head.shape, 1)
    clamped = jnp.clip(head, LOG_STD_MIN, LOG_STD_MAX)
    is_log_std = (col >= A) & (col < 2 * A)
    is_std = (col >= 2 * A) & (col < 3 * A)

    out = jnp.where(is_log_std, clamped, head)                   # clamp log_std cols
    out = jnp.where(is_std, jnp.exp(clamped), out)               # std = exp(log_std)
    out_ref[...] = out.astype(out_ref.dtype)                     # [TB, OUT_PAD]


def _forward_impl(state, params, *, batch_tile=512):
    """Runs the fused kernel. Returns (mean, log_std, std)."""
    B, num_inputs = state.shape
    H = params["w1"].shape[1]
    A = params["wm"].shape[1]
    out_pad = _round_up(3 * A, 128)                              # lane-dense output

    # Fused, zero-padded head weight/bias: [wm | ws | ws | 0].
    wh = jnp.zeros((H, out_pad), jnp.float32)
    wh = wh.at[:, 0:A].set(params["wm"])
    wh = wh.at[:, A:2 * A].set(params["ws"])
    wh = wh.at[:, 2 * A:3 * A].set(params["ws"])
    bh = jnp.zeros((1, out_pad), jnp.float32)
    bh = bh.at[:, 0:A].set(params["bm"])
    bh = bh.at[:, A:2 * A].set(params["bs"])
    bh = bh.at[:, 2 * A:3 * A].set(params["bs"])

    # Batch tiling: weights stay VMEM-resident; activations stream per tile.
    tb = min(_round_up(B, 8), batch_tile)
    b_pad = _round_up(B, tb)
    x = state if b_pad == B else jnp.pad(state, ((0, b_pad - B), (0, 0)))
    grid = (b_pad // tb,)

    flops = 2 * b_pad * (num_inputs * H + H * H + H * out_pad)
    bytes_accessed = 4 * (x.size + params["w1"].size + params["b1"].size +
                          params["w2"].size + params["b2"].size +
                          wh.size + bh.size + b_pad * out_pad)

    const = lambda i: (0, 0)
    fn = pl.pallas_call(
        functools.partial(_gaussian_policy_kernel, num_actions=A),
        out_shape=jax.ShapeDtypeStruct((b_pad, out_pad), jnp.float32),
        grid=grid,
        in_specs=[
            pl.BlockSpec((tb, num_inputs), lambda i: (i, 0)),    # state tile
            pl.BlockSpec((num_inputs, H), const),                # w1 (resident)
            pl.BlockSpec((1, H), const),                         # b1
            pl.BlockSpec((H, H), const),                         # w2
            pl.BlockSpec((1, H), const),                         # b2
            pl.BlockSpec((H, out_pad), const),                   # fused head W
            pl.BlockSpec((1, out_pad), const),                   # fused head b
        ],
        out_specs=pl.BlockSpec((tb, out_pad), lambda i: (i, 0)),
        compiler_params=pltpu.CompilerParams(
            dimension_semantics=("parallel",)),   # shards batch tiles over TCs (v7x)
        cost_estimate=pl.CostEstimate(
            flops=flops,
            transcendentals=b_pad * out_pad,
            bytes_accessed=bytes_accessed),
    )
    out = fn(x, params["w1"], params["b1"], params["w2"], params["b2"], wh, bh)

    mean = out[:B, 0:A]
    log_std = out[:B, A:2 * A]
    std = out[:B, 2 * A:3 * A]
    return mean, log_std, std


def gaussian_policy_forward(state, params):
    """GaussianPolicy.forward: returns (mean, log_std)."""
    mean, log_std, _ = _forward_impl(state, params)
    return mean, log_std


def gaussian_policy_forward_with_std(state, params):
    """Returns (mean, log_std, std=exp(log_std)); std is fused into the kernel."""
    return _forward_impl(state, params)


def init_params(key, num_inputs, num_actions, hidden_size=32, init_w=0.003):
    """Synthetic init mirroring the PyTorch module's __init__.

    linear1 / linear2 use nn.Linear's default uniform(-1/sqrt(fan_in), ...)
    scheme; mean / log_std heads use uniform(-init_w, init_w).
    Weights are stored [in, out]; biases [1, out].
    """
    ks = jax.random.split(key, 8)

    def u(k, shape, bound):
        return jax.random.uniform(k, shape, jnp.float32, -bound, bound)

    b1_bound = 1.0 / jnp.sqrt(num_inputs)
    b2_bound = 1.0 / jnp.sqrt(hidden_size)

    return {
        "w1": u(ks[0], (num_inputs, hidden_size), b1_bound),
        "b1": u(ks[1], (1, hidden_size), b1_bound),
        "w2": u(ks[2], (hidden_size, hidden_size), b2_bound),
        "b2": u(ks[3], (1, hidden_size), b2_bound),
        "wm": u(ks[4], (hidden_size, num_actions), init_w),
        "bm": u(ks[5], (1, num_actions), init_w),
        "ws": u(ks[6], (hidden_size, num_actions), init_w),
        "bs": u(ks[7], (1, num_actions), init_w),
    }


def _reference_forward(state, params):
    """Pure-JAX reference with the same bf16-operand / f32-accumulate math."""
    bf = lambda a: a.astype(jnp.bfloat16)
    dot = lambda a, b: jnp.dot(bf(a), bf(b), preferred_element_type=jnp.float32)
    h1 = jnp.maximum(dot(state, params["w1"]) + params["b1"], 0.0)
    h2 = jnp.maximum(dot(h1, params["w2"]) + params["b2"], 0.0)
    mean = dot(h2, params["wm"]) + params["bm"]
    log_std = jnp.clip(dot(h2, params["ws"]) + params["bs"],
                       LOG_STD_MIN, LOG_STD_MAX)
    return mean, log_std


if __name__ == "__main__":
    # Small shapes consistent with the module's forward:
    # state: [batch, num_inputs] -> (mean, log_std): [batch, num_actions]
    batch = 8
    num_inputs = 16
    num_actions = 8
    hidden_size = 32

    key = jax.random.PRNGKey(0)
    k_state, k_params = jax.random.split(key)

    state = jax.random.normal(k_state, (batch, num_inputs), dtype=jnp.float32)
    params = init_params(k_params, num_inputs, num_actions, hidden_size)

    mean, log_std, std = gaussian_policy_forward_with_std(state, params)
    mean = jax.block_until_ready(mean)
    log_std = jax.block_until_ready(log_std)
    std = jax.block_until_ready(std)

    # Sanity-check against the pure-JAX reference (same bf16 matmul math).
    ref_mean, ref_log_std = _reference_forward(state, params)
    assert mean.shape == (batch, num_actions)
    assert log_std.shape == (batch, num_actions)
    assert jnp.allclose(mean, ref_mean, atol=1e-4, rtol=1e-4), "mean mismatch"
    assert jnp.allclose(log_std, ref_log_std, atol=1e-4, rtol=1e-4), "log_std mismatch"
    assert jnp.allclose(std, jnp.exp(log_std), atol=1e-4, rtol=1e-3), "std mismatch"
    assert bool(jnp.all(log_std >= LOG_STD_MIN)) and bool(jnp.all(log_std <= LOG_STD_MAX))

    print("KERNEL_OK")
</pallas_src>

<mosaic_0001>
module attributes {stable_mosaic.version = 11 : i64} {
  func.func @_gaussian_policy_kernel(%arg0: i32, %arg1: memref<8x16xf32, #tpu.memory_space<vmem>>, %arg2: memref<16x32xf32, #tpu.memory_space<vmem>>, %arg3: memref<1x32xf32, #tpu.memory_space<vmem>>, %arg4: memref<32x32xf32, #tpu.memory_space<vmem>>, %arg5: memref<1x32xf32, #tpu.memory_space<vmem>>, %arg6: memref<32x128xf32, #tpu.memory_space<vmem>>, %arg7: memref<1x128xf32, #tpu.memory_space<vmem>>, %arg8: memref<8x128xf32, #tpu.memory_space<vmem>>) attributes {dimension_semantics = [#tpu.dimension_semantics<parallel>], iteration_bounds = array<i64: 1>, scalar_prefetch = 0 : i64, scratch_operands = 0 : i64, tpu.core_type = #tpu.core_type<tc>, window_params = [{transform_indices = @transform_0, window_bounds = array<i64: 8, 16>}, {pipeline_mode = #tpu.pipeline_mode<synchronous>, transform_indices = @transform_1, window_bounds = array<i64: 16, 32>}, {pipeline_mode = #tpu.pipeline_mode<synchronous>, transform_indices = @transform_2, window_bounds = array<i64: 1, 32>}, {pipeline_mode = #tpu.pipeline_mode<synchronous>, transform_indices = @transform_3, window_bounds = array<i64: 32, 32>}, {pipeline_mode = #tpu.pipeline_mode<synchronous>, transform_indices = @transform_4, window_bounds = array<i64: 1, 32>}, {pipeline_mode = #tpu.pipeline_mode<synchronous>, transform_indices = @transform_5, window_bounds = array<i64: 32, 128>}, {pipeline_mode = #tpu.pipeline_mode<synchronous>, transform_indices = @transform_6, window_bounds = array<i64: 1, 128>}, {transform_indices = @transform_7, window_bounds = array<i64: 8, 128>}]} {
    %c0 = arith.constant 0 : index
    %c0_0 = arith.constant 0 : index
    %0 = vector.load %arg1[%c0, %c0_0] : memref<8x16xf32, #tpu.memory_space<vmem>>, vector<8x16xf32>
    %1 = arith.truncf %0 : vector<8x16xf32> to vector<8x16xbf16>
    %c0_1 = arith.constant 0 : index
    %c0_2 = arith.constant 0 : index
    %2 = vector.load %arg2[%c0_1, %c0_2] : memref<16x32xf32, #tpu.memory_space<vmem>>, vector<16x32xf32>
    %3 = arith.truncf %2 : vector<16x32xf32> to vector<16x32xbf16>
    %cst = arith.constant dense<0.000000e+00> : vector<8x32xf32>
    %4 = tpu.matmul %1, %3, %cst {dimension_numbers = #tpu.dot_dimension_numbers<[1], [0], [0], [1], [0, 0, 1, 1], [], []>} : vector<8x16xbf16>, vector<16x32xbf16>, vector<8x32xf32> -> vector<8x32xf32>
    %c0_3 = arith.constant 0 : index
    %c0_4 = arith.constant 0 : index
    %5 = vector.load %arg3[%c0_3, %c0_4] : memref<1x32xf32, #tpu.memory_space<vmem>>, vector<1x32xf32>
    %6 = vector.broadcast %5 : vector<1x32xf32> to vector<8x32xf32>
    %7 = arith.addf %4, %6 : vector<8x32xf32>
    %cst_5 = arith.constant 0.000000e+00 : f32
    %8 = vector.broadcast %cst_5 : f32 to vector<8x32xf32>
    %9 = arith.maximumf %7, %8 : vector<8x32xf32>
    %10 = arith.truncf %9 : vector<8x32xf32> to vector<8x32xbf16>
    %c0_6 = arith.constant 0 : index
    %c0_7 = arith.constant 0 : index
    %11 = vector.load %arg4[%c0_6, %c0_7] : memref<32x32xf32, #tpu.memory_space<vmem>>, vector<32x32xf32>
    %12 = arith.truncf %11 : vector<32x32xf32> to vector<32x32xbf16>
    %cst_8 = arith.constant dense<0.000000e+00> : vector<8x32xf32>
    %13 = tpu.matmul %10, %12, %cst_8 {dimension_numbers = #tpu.dot_dimension_numbers<[1], [0], [0], [1], [0, 0, 1, 1], [], []>} : vector<8x32xbf16>, vector<32x32xbf16>, vector<8x32xf32> -> vector<8x32xf32>
    %c0_9 = arith.constant 0 : index
    %c0_10 = arith.constant 0 : index
    %14 = vector.load %arg5[%c0_9, %c0_10] : memref<1x32xf32, #tpu.memory_space<vmem>>, vector<1x32xf32>
    %15 = vector.broadcast %14 : vector<1x32xf32> to vector<8x32xf32>
    %16 = arith.addf %13, %15 : vector<8x32xf32>
    %cst_11 = arith.constant 0.000000e+00 : f32
    %17 = vector.broadcast %cst_11 : f32 to vector<8x32xf32>
    %18 = arith.maximumf %16, %17 : vector<8x32xf32>
    %19 = arith.truncf %18 : vector<8x32xf32> to vector<8x32xbf16>
    %c0_12 = arith.constant 0 : index
    %c0_13 = arith.constant 0 : index
    %20 = vector.load %arg6[%c0_12, %c0_13] : memref<32x128xf32, #tpu.memory_space<vmem>>, vector<32x128xf32>
    %21 = arith.truncf %20 : vector<32x128xf32> to vector<32x128xbf16>
    %cst_14 = arith.constant dense<0.000000e+00> : vector<8x128xf32>
    %22 = tpu.matmul %19, %21, %cst_14 {dimension_numbers = #tpu.dot_dimension_numbers<[1], [0], [0], [1], [0, 0, 1, 1], [], []>} : vector<8x32xbf16>, vector<32x128xbf16>, vector<8x128xf32> -> vector<8x128xf32>
    %c0_15 = arith.constant 0 : index
    %c0_16 = arith.constant 0 : index
    %23 = vector.load %arg7[%c0_15, %c0_16] : memref<1x128xf32, #tpu.memory_space<vmem>>, vector<1x128xf32>
    %24 = vector.broadcast %23 : vector<1x128xf32> to vector<8x128xf32>
    %25 = arith.addf %22, %24 : vector<8x128xf32>
    %26 = tpu.iota {dimensions = array<i32: 1>} : vector<8x128xi32>
    %cst_17 = arith.constant -2.000000e+01 : f32
    %cst_18 = arith.constant 2.000000e+00 : f32
    %27 = vector.broadcast %cst_17 : f32 to vector<8x128xf32>
    %28 = arith.maximumf %27, %25 : vector<8x128xf32>
    %29 = vector.broadcast %cst_18 : f32 to vector<8x128xf32>
    %30 = arith.minimumf %29, %28 : vector<8x128xf32>
    %c8_i32 = arith.constant 8 : i32
    %31 = vector.broadcast %c8_i32 : i32 to vector<8x128xi32>
    %32 = arith.cmpi sge, %26, %31 : vector<8x128xi32>
    %c16_i32 = arith.constant 16 : i32
    %33 = vector.broadcast %c16_i32 : i32 to vector<8x128xi32>
    %34 = arith.cmpi slt, %26, %33 : vector<8x128xi32>
    %35 = arith.andi %32, %34 : vector<8x128xi1>
    %c16_i32_19 = arith.constant 16 : i32
    %36 = vector.broadcast %c16_i32_19 : i32 to vector<8x128xi32>
    %37 = arith.cmpi sge, %26, %36 : vector<8x128xi32>
    %c24_i32 = arith.constant 24 : i32
    %38 = vector.broadcast %c24_i32 : i32 to vector<8x128xi32>
    %39 = arith.cmpi slt, %26, %38 : vector<8x128xi32>
    %40 = arith.andi %37, %39 : vector<8x128xi1>
    %41 = arith.select %35, %30, %25 : vector<8x128xi1>, vector<8x128xf32>
    %42 = math.exp %30 : vector<8x128xf32>
    %43 = arith.select %40, %42, %41 : vector<8x128xi1>, vector<8x128xf32>
    %c0_20 = arith.constant 0 : index
    %c0_21 = arith.constant 0 : index
    %44 = vector.load %arg8[%c0_20, %c0_21] : memref<8x128xf32, #tpu.memory_space<vmem>>, vector<8x128xf32>
    tpu.vector_store %arg8[%c0_20, %c0_21], %43 {strides = array<i32>} : memref<8x128xf32, #tpu.memory_space<vmem>>, vector<8x128xf32>,
    return
  }
  func.func @transform_0(%arg0: i32) -> (i32, i32) {
    %c0_i32 = arith.constant 0 : i32
    %c0_i32_0 = arith.constant 0 : i32
    return %arg0, %c0_i32 : i32, i32
  }
  func.func @transform_1(%arg0: i32) -> (i32, i32) {
    %c0_i32 = arith.constant 0 : i32
    %c0_i32_0 = arith.constant 0 : i32
    %c0_i32_1 = arith.constant 0 : i32
    return %c0_i32, %c0_i32_0 : i32, i32
  }
  func.func @transform_2(%arg0: i32) -> (i32, i32) {
    %c0_i32 = arith.constant 0 : i32
    %c0_i32_0 = arith.constant 0 : i32
    %c0_i32_1 = arith.constant 0 : i32
    return %c0_i32, %c0_i32_0 : i32, i32
  }
  func.func @transform_3(%arg0: i32) -> (i32, i32) {
    %c0_i32 = arith.constant 0 : i32
    %c0_i32_0 = arith.constant 0 : i32
    %c0_i32_1 = arith.constant 0 : i32
    return %c0_i32, %c0_i32_0 : i32, i32
  }
  func.func @transform_4(%arg0: i32) -> (i32, i32) {
    %c0_i32 = arith.constant 0 : i32
    %c0_i32_0 = arith.constant 0 : i32
    %c0_i32_1 = arith.constant 0 : i32
    return %c0_i32, %c0_i32_0 : i32, i32
  }
  func.func @transform_5(%arg0: i32) -> (i32, i32) {
    %c0_i32 = arith.constant 0 : i32
    %c0_i32_0 = arith.constant 0 : i32
    %c0_i32_1 = arith.constant 0 : i32
    return %c0_i32, %c0_i32_0 : i32, i32
  }
  func.func @transform_6(%arg0: i32) -> (i32, i32) {
    %c0_i32 = arith.constant 0 : i32
    %c0_i32_0 = arith.constant 0 : i32
    %c0_i32_1 = arith.constant 0 : i32
    return %c0_i32, %c0_i32_0 : i32, i32
  }
  func.func @transform_7(%arg0: i32) -> (i32, i32) {
    %c0_i32 = arith.constant 0 : i32
    %c0_i32_0 = arith.constant 0 : i32
    return %arg0, %c0_i32 : i32, i32
  }
}

</mosaic_0001>

<bundles_post_ra>
// kernel: tpu_custom_call.1
= control target key start
LH: loop header
LB: loop body
LE: loop exit
PB: predicated region body
PF: predicated region fallthrough
CT: control target
= control target key end

     0   :  { %12 = vsyncpa [#allocation3], 0  ;;  %s525_s0 = inlined_call_operand.hbm [shape: f32[8,16], index: 0, kind: input, shape index: {}]   ;;  %s526_s1 = inlined_call_operand.hbm [shape: f32[16,32], index: 1, kind: input, shape index: {}]   ;;  %s527_s2 = inlined_call_operand.vmem [shape: f32[1,32], index: 2, kind: input, shape index: {}]   ;;  %s528_s3 = inlined_call_operand.hbm [shape: f32[32,32], index: 3, kind: input, shape index: {}]   ;;  %s529_s4 = inlined_call_operand.vmem [shape: f32[1,32], index: 4, kind: input, shape index: {}]   ;;  %s530_s5 = inlined_call_operand.hbm [shape: f32[32,128], index: 5, kind: input, shape index: {}]   ;;  %s531_s6 = inlined_call_operand.vmem [shape: f32[1,128], index: 6, kind: input, shape index: {}]   ;;  %s532_s7 = inlined_call_operand.hbm [shape: f32[8,128], index: 7, kind: output, shape index: {}]  }
   0x1   :  { %13 = vsyncpa [#allocation6], 0 }
   0x2   :  { %14 = vsyncpa [#allocation9], 0 }
   0x3   :  { %15 = vsyncpa [#allocation4], 0  ;;  %s441_s24 = smov [#allocation5]  }
   0x4   :  { %s31_s25 = sshll.u32 %s441_s24, 4  ;;  %s32_s25 = int_to_ptr.vmem [resolvable:$true] %s31_s25 }
   0x5   :  { %s341_s26 = scalar_lea.vmem %s32_s25, 256  ;;  %p346_p1 = scmp.lt.s32.totalorder %s32_s25, %s32_s25 }
   0x6   :  { %p342_p0 = scmp.ne.s32.totalorder %s32_s25, %s341_s26  ;;  %p347_p2 = scmp.lt.s32.totalorder %s341_s26, %s341_s26 }
   0x8   :  { %p348_p3 = por %p347_p2, %p346_p1 }
   0xa   :  { %p349_p4 = pnand %p348_p3, %p342_p0 }
   0xc   :  { %352 = shalt.err (!%p349_p4)
}
   0xd   :  { %s442_s27 = smov 128   ;;  %s443_s28 = smov 8  }
   0xe   :  { %37 = dma.hbm_to_vmem [thread:$0]  %s526_s1, 256, %s32_s25, [#allocation6], %s442_s27, %s442_s27, %s443_s28  }
   0xf   :  { %s444_s8 = smov [#allocation2]   ;;  %s445_s10 = smov [#allocation7]  }
  0x10   :  { %s22_s9 = sshll.u32 %s444_s8, 4  ;;  %s45_s11 = sshll.u32 %s445_s10, 4  ;;  %s23_s9 = int_to_ptr.vmem [resolvable:$true] %s22_s9  ;;  %s46_s11 = int_to_ptr.vmem [resolvable:$true] %s45_s11 }
  0x11   :  { %s361_s12 = scalar_lea.vmem %s23_s9, 128  ;;  %p366_p6 = scmp.lt.s32.totalorder %s23_s9, %s23_s9 }
  0x12   :  { %p362_p5 = scmp.ne.s32.totalorder %s23_s9, %s361_s12  ;;  %p367_p7 = scmp.lt.s32.totalorder %s361_s12, %s361_s12 }
  0x14   :  { %p368_p8 = por %p367_p7, %p366_p6 }
  0x16   :  { %p369_p9 = pnand %p368_p8, %p362_p5 }
  0x18   :  { %372 = shalt.err (!%p369_p9)
}
  0x19   :  { %25 = dma.hbm_to_vmem [thread:$0]  %s525_s0, 128, %s23_s9, [#allocation3]  }
  0x1a   :  { %s381_s15 = scalar_lea.vmem %s46_s11, 512  ;;  %p386_p11 = scmp.lt.s32.totalorder %s46_s11, %s46_s11 }
  0x1b   :  { %p382_p10 = scmp.ne.s32.totalorder %s46_s11, %s381_s15  ;;  %p387_p12 = scmp.lt.s32.totalorder %s381_s15, %s381_s15 }
  0x1d   :  { %p388_p13 = por %p387_p12, %p386_p11 }
  0x1f   :  { %p389_p0 = pnand %p388_p13, %p382_p10 }
  0x21   :  { %392 = shalt.err (!%p389_p0)
}
  0x22   :  { %51 = dma.hbm_to_vmem [thread:$0]  %s528_s3, 512, %s46_s11, [#allocation6], %s442_s27, %s442_s27, %s443_s28  }
  0x23   :  { %s446_s17 = smov [#allocation8]  }
  0x24   :  { %s59_s18 = sshll.u32 %s446_s17, 4  ;;  %s60_s18 = int_to_ptr.vmem [resolvable:$true] %s59_s18 }
  0x25   :  { %s401_s19 = scalar_lea.vmem %s60_s18, 512  ;;  %p406_p2 = scmp.lt.s32.totalorder %s60_s18, %s60_s18 }
  0x26   :  { %p402_p1 = scmp.ne.s32.totalorder %s60_s18, %s401_s19  ;;  %p407_p3 = scmp.lt.s32.totalorder %s401_s19, %s401_s19 }
  0x28   :  { %p408_p4 = por %p407_p3, %p406_p2 }
  0x2a   :  { %p409_p5 = pnand %p408_p4, %p402_p1 }
  0x2c   :  { %412 = shalt.err (!%p409_p5)
}
  0x2d   :  { %65 = dma.hbm_to_vmem [thread:$0]  %s530_s5, 512, %s60_s18, [#allocation9], %s442_s27, %s442_s27, %s443_s28  }
  0x2e   :  { %433 = dma.done.wait [#allocation3], 128  }
  0x2f   :  { %434 = vsyncadd [#allocation3], 4294967168 }
  0x30   :  { %435 = dma.done.wait [#allocation6], 768  }
  0x31   :  { %436 = vsyncadd [#allocation6], 4294966528 }
  0x32   :  { %437 = dma.done.wait [#allocation9], 512  }
  0x33   :  { %438 = vsyncadd [#allocation9], 4294966784  ;;  %v447_v0 = vmov 0.0   ;;  %vm448_vm0 = vmmov 0   ;;  %v83_v1 = vld [vmem:[#allocation5] sm:$0xff]  ;;  %v84_v2 = vld [vmem:[#allocation5 + $0x8] sm:$0xff]  ;;  %v254_v43 = vlaneseq }
  0x34   :  { %300 = vmatprep.subr.bf16.mxu0 %v447_v0  ;;  %302 = vmatprep.mubr.msk.bf16.mxu0 %vm448_vm0, %v447_v0  ;;  %v81_v3 = vld [vmem:[#allocation2] sm:$0xff]  ;;  %v85_v4 = vpack.c.bf16 %v84_v2, %v83_v1  ;;  %vm93_vm1 = vcmask 130048   ;;  %v141_v6 = vld [vmem:[#allocation7 + $0x10] sm:$0xff]  ;;  %v142_v7 = vld [vmem:[#allocation7 + $0x18] sm:$0xff]  ;;  %vm152_vm2 = vcmask 261120  }
  0x35   :  { %306 = vmatprep.subr.bf16.mxu1 %v447_v0  ;;  %310 = vmatprep.mubr.msk.bf16.mxu1 %vm448_vm0, %v447_v0  ;;  %v82_v5 = vpack.c.bf16 %v81_v3, %v81_v3  ;;  %v144_v8 = vpack.c.bf16 %v142_v7, %v141_v6  ;;  %v139_v9 = vld [vmem:[#allocation7] sm:$0xff]  ;;  %v140_v10 = vld [vmem:[#allocation7 + $0x8] sm:$0xff]  ;;  %v200_v12 = vld [vmem:[#allocation8 + $0x10] sm:$0xff]  ;;  %v255_v44 = vand.u32 127, %v254_v43 }
  0x36   :  { %301 = vmatpush3.bf16.msra.mxu0 %v85_v4  ;;  %v143_v11 = vpack.c.bf16 %v140_v10, %v139_v9  ;;  %v201_v13 = vld [vmem:[#allocation8 + $0x18] sm:$0xff]  ;;  %v286_v15 = vld [vmem:[%s527_s2] ss:$0 sm:$0xff]  ;;  %v198_v23 = vld [vmem:[#allocation8] sm:$0xff] }
  0x37   :  { %314 = vmatprep.subr.bf16.mxu0 %v447_v0  ;;  %307 = vmatpush3.bf16.msra.mxu1 %v144_v8  ;;  %v203_v14 = vpack.c.bf16 %v201_v13, %v200_v12  ;;  %v199_v24 = vld [vmem:[#allocation8 + $0x8] sm:$0xff]  ;;  %vm258_vm3 = vcmp.ge.s32.totalorder %v255_v44, 8  ;;  %vm259_vm4 = vcmp.lt.s32.totalorder %v255_v44, 16  ;;  %vm261_vm5 = vcmp.ge.s32.totalorder %v255_v44, 16 }
  0x38   :  { %308 = vmatprep.subr.bf16.mxu1 %v447_v0  ;;  %v202_v25 = vpack.c.bf16 %v199_v24, %v198_v23  ;;  %v288_v26 = vld [vmem:[%s529_s4] ss:$0 sm:$0xff]  ;;  %vm262_vm6 = vcmp.lt.s32.totalorder %v255_v44, 24  ;;  %vm260_vm7 = vmand %vm258_vm3, %vm259_vm4  ;;  %s449_s4 = smov [#allocation10]  }
  0x39   :  { %303 = vmatmul.mubr.msk.bf16.vlgmr.msra.gmra.mxu0 %vm93_vm1, %v82_v5  ;;  %v290_v34 = vld [vmem:[%s531_s6] ss:$0 sm:$0xff]  ;;  %s275_s24 = sshll.u32 %s449_s4, 4  ;;  %vm263_vm8 = vmand %vm261_vm5, %vm262_vm6  ;;  %s276_s24 = int_to_ptr.vmem [resolvable:$true] %s275_s24 }
  0x3a   :  { %318 = vmatprep.mubr.msk.bf16.mxu0 %vm448_vm0, %v447_v0  ;;  %315 = vmatpush3.bf16.msra.mxu0 %v203_v14  ;;  %s413_s6 = scalar_lea.vmem %s276_s24, 128  ;;  %p418_p7 = scmp.lt.s32.totalorder %s276_s24, %s276_s24 }
  0x3b   :  { %309 = vmatpush3.bf16.msra.mxu1 %v143_v11  ;;  %316 = vmatprep.subr.bf16.mxu0 %v447_v0  ;;  %p414_p6 = scmp.ne.s32.totalorder %s276_s24, %s413_s6  ;;  %p419_p8 = scmp.lt.s32.totalorder %s413_s6, %s413_s6 }
  0x3d   :  { %p420_p9 = por %p419_p8, %p418_p7 }
  0x3e   :  { %317 = vmatpush3.bf16.msra.mxu0 %v202_v25 }
  0x3f   :  { %p421_p10 = pnand %p420_p9, %p414_p6 }
  0xf9   :  { %v131_v16 = vpop.f32.mrf.mxu0 }
  0xfa   :  { %v132_v17 = vadd.f32 %v286_v15, %v131_v16 }
  0xfb   :  { %v304_v18 = vpop.f32.mrf.mxu0 }
  0xfc   :  { %v137_v19 = vmax.f32 %v132_v17, 0.0 }
  0xfd   :  { %v134_v20 = vpop.f32.mrf.mxu0 }
  0xfe   :  { %v138_v21 = vpack.c.bf16 %v137_v19, %v137_v19 }
  0xff   :  { %v305_v22 = vpop.f32.mrf.mxu0 }
 0x100   :  { %311 = vmatmul.mubr.msk.bf16.vlgmr.msra.gmra.mxu1 %vm152_vm2, %v138_v21 }
 0x1c0   :  { %v190_v27 = vpop.f32.mrf.mxu1 }
 0x1c1   :  { %v191_v28 = vadd.f32 %v288_v26, %v190_v27 }
 0x1c2   :  { %v312_v29 = vpop.f32.mrf.mxu1 }
 0x1c3   :  { %v196_v30 = vmax.f32 %v191_v28, 0.0 }
 0x1c4   :  { %v193_v31 = vpop.f32.mrf.mxu1 }
 0x1c5   :  { %v197_v32 = vpack.c.bf16 %v196_v30, %v196_v30 }
 0x1c6   :  { %v313_v33 = vpop.f32.mrf.mxu1 }
 0x1c7   :  { %319 = vmatmul.mubr.msk.bf16.vlgmr.msra.gmra.mxu0 %vm152_vm2, %v197_v32 }
 0x287   :  { %v248_v35 = vpop.f32.mrf.mxu0 }
 0x288   :  { %v249_v36 = vadd.f32 %v290_v34, %v248_v35 }
 0x289   :  { %v320_v37 = vpop.f32.mrf.mxu0 }
 0x28a   :  { %v256_v38 = vmax.f32 %v249_v36, -20.0 }
 0x28b   :  { %v251_v39 = vpop.f32.mrf.mxu0 }
 0x28c   :  { %v257_v40 = vmin.f32 %v256_v38, 2.0 }
 0x28d   :  { %v321_v41 = vpop.f32.mrf.mxu0 }
 0x28e   :  { %v265_v42 = vmul.f32 1.442695, %v257_v40  ;;  %v264_v46 = vsel %vm260_vm7, %v257_v40, %v249_v36 }
 0x290   :  { %331 = vpow2.f32 %v265_v42 }
 0x29d   :  { %v332_v45 = vpop.eup %331 }
 0x29e   :  { %v267_v47 = vsel %vm263_vm8, %v332_v45, %v264_v46 }
 0x29f   :  { %268 = vst [vmem:[#allocation10] sm:$0xff] %v267_v47 }
 0x2a0   :  { %424 = shalt.err (!%p421_p10)
}
 0x2a1   :  { %278 = dma.vmem_to_hbm [thread:$0]  %s276_s24, 128, %s532_s7, [#allocation4]  }
 0x2a2   :  { %439 = dma.done.wait [#allocation4], 128  }
 0x2a3   :  { %440 = vsyncadd [#allocation4], 4294967168 }
 0x2a4   :  { %282 = vsyncpa [#allocation3], 1 }
 0x2a5   :  { %283 = vsyncpa [#allocation6], 1 }
 0x2a6   :  { %284 = vsyncpa [#allocation9], 1 }
 0x2a7   :  { %285 = vsyncpa [#allocation4], 1 }

</bundles_post_ra>
